<compile_context>
chip_gen: v7x
topology: tpu7x:2x2x1
jax: 0.10.0
libtpu: 0.0.40
codegen_flags: <defaults>
</compile_context>

<pallas_src>
import math

import jax
import jax.numpy as jnp
from jax.experimental import pallas as pl
from jax.experimental.pallas import tpu as pltpu

# Logical (PyTorch) feature sizes.
D_IN, H1, H2, D_OUT = 20, 100, 200, 20
# Lane-padded hidden / output sizes (multiples of 128). Input stays at 20.
P_H1, P_H2, P_OUT = 128, 256, 128


def _silu(x):
    # SiLU(x) = x * sigmoid(x); sigmoid lowers to the (otherwise idle) EUP slot.
    return x * jax.nn.sigmoid(x)


def mlp_kernel(x_ref,
               w1_ref, b1_ref,
               w2_ref, b2_ref,
               w3_ref, b3_ref,
               w4_ref, b4_ref,
               o_ref):
    # x tile: (TB, 20) f32 -> cast to bf16 in-kernel. Weights bf16, biases f32.
    x = x_ref[...].astype(jnp.bfloat16)

    h = jnp.dot(x, w1_ref[...],
                preferred_element_type=jnp.float32) + b1_ref[...]
    h = _silu(h)

    h = jnp.dot(h.astype(jnp.bfloat16), w2_ref[...],
                preferred_element_type=jnp.float32) + b2_ref[...]
    h = _silu(h)

    h = jnp.dot(h.astype(jnp.bfloat16), w3_ref[...],
                preferred_element_type=jnp.float32) + b3_ref[...]
    h = _silu(h)

    h = jnp.dot(h.astype(jnp.bfloat16), w4_ref[...],
                preferred_element_type=jnp.float32) + b4_ref[...]

    o_ref[...] = h.astype(o_ref.dtype)  # bf16 slab, full-lane store


def _round_up(n, m):
    return pl.cdiv(n, m) * m


def _pad2d(a, rows, cols):
    return jnp.pad(a, ((0, rows - a.shape[0]), (0, cols - a.shape[1])))


def pad_params(params):
    """Zero-pad weights/biases to lane-padded shapes; weights cast to bf16.

    w1 keeps its real input dim (20); only output dims are padded to 128/256.
    """
    return {
        "w1": _pad2d(params["w1"], D_IN, P_H1).astype(jnp.bfloat16),
        "b1": _pad2d(params["b1"], 1, P_H1).astype(jnp.float32),
        "w2": _pad2d(params["w2"], P_H1, P_H2).astype(jnp.bfloat16),
        "b2": _pad2d(params["b2"], 1, P_H2).astype(jnp.float32),
        "w3": _pad2d(params["w3"], P_H2, P_H1).astype(jnp.bfloat16),
        "b3": _pad2d(params["b3"], 1, P_H1).astype(jnp.float32),
        "w4": _pad2d(params["w4"], P_H1, P_OUT).astype(jnp.bfloat16),
        "b4": _pad2d(params["b4"], 1, P_OUT).astype(jnp.float32),
    }


def mlp_forward(x, padded_params, tb_max=2048):
    """x: (B, 20) float32. padded_params: output of pad_params(). Returns (B, 20) f32."""
    B = x.shape[0]

    # Batch tile: at least 2 grid steps when B > 8 so "parallel" can shard the
    # grid across the 2 TensorCores on v7x; capped at tb_max for big batches.
    if B <= 8:
        TB = 8
    else:
        TB = min(tb_max, _round_up(pl.cdiv(B, 2), 8))
    B_pad = _round_up(B, TB)

    # Only the batch dim is padded (feature dim stays 20, no lane-pad copy).
    if B_pad != B:
        x = jnp.pad(x, ((0, B_pad - B), (0, 0)))

    p = padded_params
    operands = (x, p["w1"], p["b1"], p["w2"], p["b2"],
                p["w3"], p["b3"], p["w4"], p["b4"])

    def resident(arr):
        # Whole array, same block for every grid step -> stays in VMEM.
        return pl.BlockSpec(arr.shape, lambda i: (0, 0))

    out_padded = pl.pallas_call(
        mlp_kernel,
        out_shape=jax.ShapeDtypeStruct((B_pad, P_OUT), jnp.bfloat16),
        grid=(B_pad // TB,),
        in_specs=[
            pl.BlockSpec((TB, D_IN), lambda i: (i, 0)),   # x: tiled over batch
            resident(p["w1"]), resident(p["b1"]),
            resident(p["w2"]), resident(p["b2"]),
            resident(p["w3"]), resident(p["b3"]),
            resident(p["w4"]), resident(p["b4"]),
        ],
        out_specs=pl.BlockSpec((TB, P_OUT), lambda i: (i, 0)),
        compiler_params=pltpu.CompilerParams(
            dimension_semantics=("parallel",)),
    )(*operands)

    return out_padded[:B, :D_OUT].astype(jnp.float32)


def init_mlp_params(key):
    """Deterministic init matching PyTorch nn.Linear default (uniform +-1/sqrt(fan_in))."""
    dims = [(D_IN, H1), (H1, H2), (H2, H1), (H1, D_OUT)]
    params = {}
    for idx, (fan_in, fan_out) in enumerate(dims, start=1):
        key, kw, kb = jax.random.split(key, 3)
        bound = 1.0 / math.sqrt(fan_in)
        # stored as (in, out) = transpose of PyTorch's (out, in) weight
        params[f"w{idx}"] = jax.random.uniform(
            kw, (fan_in, fan_out), jnp.float32, minval=-bound, maxval=bound)
        params[f"b{idx}"] = jax.random.uniform(
            kb, (1, fan_out), jnp.float32, minval=-bound, maxval=bound)
    return params


def mlp_reference(x, params):
    """Pure-JAX f32 reference for correctness checking."""
    h = x
    for i in range(1, 5):
        h = h @ params[f"w{i}"] + params[f"b{i}"]
        if i < 4:
            h = h * jax.nn.sigmoid(h)
    return h


if __name__ == "__main__":
    key = jax.random.PRNGKey(0)
    key, kx = jax.random.split(key)

    B = 16
    x = jax.random.normal(kx, (B, 20), dtype=jnp.float32)
    params = init_mlp_params(key)
    padded = pad_params(params)

    ref = mlp_reference(x, params)

    # B=16 -> TB=8 -> grid=(2,): exercises resident weights across grid steps
    # (and megacore sharding on v7x).
    out = jax.block_until_ready(mlp_forward(x, padded))
    assert out.shape == (B, 20)
    # bf16 matmul inputs + bf16 output slab vs f32 reference -> loose tolerance.
    assert jnp.allclose(out, ref, atol=3e-2, rtol=3e-2), "Pallas output mismatch vs reference"

    # Ragged batch (B=13, not a multiple of 8) exercises the batch-only pad path.
    x2 = x[:13]
    ref2 = mlp_reference(x2, params)
    out2 = jax.block_until_ready(mlp_forward(x2, padded))
    assert out2.shape == (13, 20)
    assert jnp.allclose(out2, ref2, atol=3e-2, rtol=3e-2), "Ragged-batch Pallas output mismatch"

    print("KERNEL_OK")
</pallas_src>

<mosaic_0001>
module attributes {stable_mosaic.version = 11 : i64} {
  func.func @mlp_kernel(%arg0: i32, %arg1: memref<8x20xf32, #tpu.memory_space<vmem>>, %arg2: memref<20x128xbf16, #tpu.memory_space<vmem>>, %arg3: memref<1x128xf32, #tpu.memory_space<vmem>>, %arg4: memref<128x256xbf16, #tpu.memory_space<vmem>>, %arg5: memref<1x256xf32, #tpu.memory_space<vmem>>, %arg6: memref<256x128xbf16, #tpu.memory_space<vmem>>, %arg7: memref<1x128xf32, #tpu.memory_space<vmem>>, %arg8: memref<128x128xbf16, #tpu.memory_space<vmem>>, %arg9: memref<1x128xf32, #tpu.memory_space<vmem>>, %arg10: memref<8x128xbf16, #tpu.memory_space<vmem>>) attributes {dimension_semantics = [#tpu.dimension_semantics<parallel>], iteration_bounds = array<i64: 2>, scalar_prefetch = 0 : i64, scratch_operands = 0 : i64, tpu.core_type = #tpu.core_type<tc>, window_params = [{transform_indices = @transform_0, window_bounds = array<i64: 8, 20>}, {pipeline_mode = #tpu.pipeline_mode<synchronous>, transform_indices = @transform_1, window_bounds = array<i64: 20, 128>}, {pipeline_mode = #tpu.pipeline_mode<synchronous>, transform_indices = @transform_2, window_bounds = array<i64: 1, 128>}, {pipeline_mode = #tpu.pipeline_mode<synchronous>, transform_indices = @transform_3, window_bounds = array<i64: 128, 256>}, {pipeline_mode = #tpu.pipeline_mode<synchronous>, transform_indices = @transform_4, window_bounds = array<i64: 1, 256>}, {pipeline_mode = #tpu.pipeline_mode<synchronous>, transform_indices = @transform_5, window_bounds = array<i64: 256, 128>}, {pipeline_mode = #tpu.pipeline_mode<synchronous>, transform_indices = @transform_6, window_bounds = array<i64: 1, 128>}, {pipeline_mode = #tpu.pipeline_mode<synchronous>, transform_indices = @transform_7, window_bounds = array<i64: 128, 128>}, {pipeline_mode = #tpu.pipeline_mode<synchronous>, transform_indices = @transform_8, window_bounds = array<i64: 1, 128>}, {transform_indices = @transform_9, window_bounds = array<i64: 8, 128>}]} {
    %c0 = arith.constant 0 : index
    %c0_0 = arith.constant 0 : index
    %0 = vector.load %arg1[%c0, %c0_0] : memref<8x20xf32, #tpu.memory_space<vmem>>, vector<8x20xf32>
    %1 = arith.truncf %0 : vector<8x20xf32> to vector<8x20xbf16>
    %c0_1 = arith.constant 0 : index
    %c0_2 = arith.constant 0 : index
    %2 = vector.load %arg2[%c0_1, %c0_2] : memref<20x128xbf16, #tpu.memory_space<vmem>>, vector<20x128xbf16>
    %cst = arith.constant dense<0.000000e+00> : vector<8x128xf32>
    %3 = tpu.matmul %1, %2, %cst {dimension_numbers = #tpu.dot_dimension_numbers<[1], [0], [0], [1], [0, 0, 1, 1], [], []>} : vector<8x20xbf16>, vector<20x128xbf16>, vector<8x128xf32> -> vector<8x128xf32>
    %c0_3 = arith.constant 0 : index
    %c0_4 = arith.constant 0 : index
    %4 = vector.load %arg3[%c0_3, %c0_4] : memref<1x128xf32, #tpu.memory_space<vmem>>, vector<1x128xf32>
    %5 = vector.broadcast %4 : vector<1x128xf32> to vector<8x128xf32>
    %6 = arith.addf %3, %5 : vector<8x128xf32>
    %7 = arith.negf %6 : vector<8x128xf32>
    %8 = math.exp %7 : vector<8x128xf32>
    %cst_5 = arith.constant 1.000000e+00 : f32
    %9 = vector.broadcast %cst_5 : f32 to vector<8x128xf32>
    %10 = arith.addf %9, %8 : vector<8x128xf32>
    %11 = arith.divf %9, %10 : vector<8x128xf32>
    %12 = arith.mulf %6, %11 : vector<8x128xf32>
    %13 = arith.truncf %12 : vector<8x128xf32> to vector<8x128xbf16>
    %c0_6 = arith.constant 0 : index
    %c0_7 = arith.constant 0 : index
    %14 = vector.load %arg4[%c0_6, %c0_7] : memref<128x256xbf16, #tpu.memory_space<vmem>>, vector<128x256xbf16>
    %cst_8 = arith.constant dense<0.000000e+00> : vector<8x256xf32>
    %15 = tpu.matmul %13, %14, %cst_8 {dimension_numbers = #tpu.dot_dimension_numbers<[1], [0], [0], [1], [0, 0, 1, 1], [], []>} : vector<8x128xbf16>, vector<128x256xbf16>, vector<8x256xf32> -> vector<8x256xf32>
    %c0_9 = arith.constant 0 : index
    %c0_10 = arith.constant 0 : index
    %16 = vector.load %arg5[%c0_9, %c0_10] : memref<1x256xf32, #tpu.memory_space<vmem>>, vector<1x256xf32>
    %17 = vector.broadcast %16 : vector<1x256xf32> to vector<8x256xf32>
    %18 = arith.addf %15, %17 : vector<8x256xf32>
    %19 = arith.negf %18 : vector<8x256xf32>
    %20 = math.exp %19 : vector<8x256xf32>
    %cst_11 = arith.constant 1.000000e+00 : f32
    %21 = vector.broadcast %cst_11 : f32 to vector<8x256xf32>
    %22 = arith.addf %21, %20 : vector<8x256xf32>
    %23 = arith.divf %21, %22 : vector<8x256xf32>
    %24 = arith.mulf %18, %23 : vector<8x256xf32>
    %25 = arith.truncf %24 : vector<8x256xf32> to vector<8x256xbf16>
    %c0_12 = arith.constant 0 : index
    %c0_13 = arith.constant 0 : index
    %26 = vector.load %arg6[%c0_12, %c0_13] : memref<256x128xbf16, #tpu.memory_space<vmem>>, vector<256x128xbf16>
    %cst_14 = arith.constant dense<0.000000e+00> : vector<8x128xf32>
    %27 = tpu.matmul %25, %26, %cst_14 {dimension_numbers = #tpu.dot_dimension_numbers<[1], [0], [0], [1], [0, 0, 1, 1], [], []>} : vector<8x256xbf16>, vector<256x128xbf16>, vector<8x128xf32> -> vector<8x128xf32>
    %c0_15 = arith.constant 0 : index
    %c0_16 = arith.constant 0 : index
    %28 = vector.load %arg7[%c0_15, %c0_16] : memref<1x128xf32, #tpu.memory_space<vmem>>, vector<1x128xf32>
    %29 = vector.broadcast %28 : vector<1x128xf32> to vector<8x128xf32>
    %30 = arith.addf %27, %29 : vector<8x128xf32>
    %31 = arith.negf %30 : vector<8x128xf32>
    %32 = math.exp %31 : vector<8x128xf32>
    %cst_17 = arith.constant 1.000000e+00 : f32
    %33 = vector.broadcast %cst_17 : f32 to vector<8x128xf32>
    %34 = arith.addf %33, %32 : vector<8x128xf32>
    %35 = arith.divf %33, %34 : vector<8x128xf32>
    %36 = arith.mulf %30, %35 : vector<8x128xf32>
    %37 = arith.truncf %36 : vector<8x128xf32> to vector<8x128xbf16>
    %c0_18 = arith.constant 0 : index
    %c0_19 = arith.constant 0 : index
    %38 = vector.load %arg8[%c0_18, %c0_19] : memref<128x128xbf16, #tpu.memory_space<vmem>>, vector<128x128xbf16>
    %cst_20 = arith.constant dense<0.000000e+00> : vector<8x128xf32>
    %39 = tpu.matmul %37, %38, %cst_20 {dimension_numbers = #tpu.dot_dimension_numbers<[1], [0], [0], [1], [0, 0, 1, 1], [], []>} : vector<8x128xbf16>, vector<128x128xbf16>, vector<8x128xf32> -> vector<8x128xf32>
    %c0_21 = arith.constant 0 : index
    %c0_22 = arith.constant 0 : index
    %40 = vector.load %arg9[%c0_21, %c0_22] : memref<1x128xf32, #tpu.memory_space<vmem>>, vector<1x128xf32>
    %41 = vector.broadcast %40 : vector<1x128xf32> to vector<8x128xf32>
    %42 = arith.addf %39, %41 : vector<8x128xf32>
    %43 = arith.truncf %42 : vector<8x128xf32> to vector<8x128xbf16>
    %c0_23 = arith.constant 0 : index
    %c0_24 = arith.constant 0 : index
    %44 = vector.load %arg10[%c0_23, %c0_24] : memref<8x128xbf16, #tpu.memory_space<vmem>>, vector<8x128xbf16>
    tpu.vector_store %arg10[%c0_23, %c0_24], %43 {strides = array<i32>} : memref<8x128xbf16, #tpu.memory_space<vmem>>, vector<8x128xbf16>,
    return
  }
  func.func @transform_0(%arg0: i32) -> (i32, i32) {
    %c0_i32 = arith.constant 0 : i32
    %c0_i32_0 = arith.constant 0 : i32
    return %arg0, %c0_i32 : i32, i32
  }
  func.func @transform_1(%arg0: i32) -> (i32, i32) {
    %c0_i32 = arith.constant 0 : i32
    %c0_i32_0 = arith.constant 0 : i32
    %c0_i32_1 = arith.constant 0 : i32
    return %c0_i32, %c0_i32_0 : i32, i32
  }
  func.func @transform_2(%arg0: i32) -> (i32, i32) {
    %c0_i32 = arith.constant 0 : i32
    %c0_i32_0 = arith.constant 0 : i32
    %c0_i32_1 = arith.constant 0 : i32
    return %c0_i32, %c0_i32_0 : i32, i32
  }
  func.func @transform_3(%arg0: i32) -> (i32, i32) {
    %c0_i32 = arith.constant 0 : i32
    %c0_i32_0 = arith.constant 0 : i32
    %c0_i32_1 = arith.constant 0 : i32
    return %c0_i32, %c0_i32_0 : i32, i32
  }
  func.func @transform_4(%arg0: i32) -> (i32, i32) {
    %c0_i32 = arith.constant 0 : i32
    %c0_i32_0 = arith.constant 0 : i32
    %c0_i32_1 = arith.constant 0 : i32
    return %c0_i32, %c0_i32_0 : i32, i32
  }
  func.func @transform_5(%arg0: i32) -> (i32, i32) {
    %c0_i32 = arith.constant 0 : i32
    %c0_i32_0 = arith.constant 0 : i32
    %c0_i32_1 = arith.constant 0 : i32
    return %c0_i32, %c0_i32_0 : i32, i32
  }
  func.func @transform_6(%arg0: i32) -> (i32, i32) {
    %c0_i32 = arith.constant 0 : i32
    %c0_i32_0 = arith.constant 0 : i32
    %c0_i32_1 = arith.constant 0 : i32
    return %c0_i32, %c0_i32_0 : i32, i32
  }
  func.func @transform_7(%arg0: i32) -> (i32, i32) {
    %c0_i32 = arith.constant 0 : i32
    %c0_i32_0 = arith.constant 0 : i32
    %c0_i32_1 = arith.constant 0 : i32
    return %c0_i32, %c0_i32_0 : i32, i32
  }
  func.func @transform_8(%arg0: i32) -> (i32, i32) {
    %c0_i32 = arith.constant 0 : i32
    %c0_i32_0 = arith.constant 0 : i32
    %c0_i32_1 = arith.constant 0 : i32
    return %c0_i32, %c0_i32_0 : i32, i32
  }
  func.func @transform_9(%arg0: i32) -> (i32, i32) {
    %c0_i32 = arith.constant 0 : i32
    %c0_i32_0 = arith.constant 0 : i32
    return %arg0, %c0_i32 : i32, i32
  }
}

</mosaic_0001>

<bundles_post_ra>
// kernel: tpu_custom_call.1
= control target key start
LH: loop header
LB: loop body
LE: loop exit
PB: predicated region body
PF: predicated region fallthrough
CT: control target
= control target key end

     0   :  { %s1956_s0 = inlined_call_operand.hbm [shape: f32[16,20], index: 0, kind: input, shape index: {}]   ;;  %s1957_s1 = inlined_call_operand.hbm [shape: bf16[20,128], index: 1, kind: input, shape index: {}]   ;;  %s1958_s2 = inlined_call_operand.vmem [shape: f32[1,128], index: 2, kind: input, shape index: {}]   ;;  %s1959_s3 = inlined_call_operand.hbm [shape: bf16[128,256], index: 3, kind: input, shape index: {}]   ;;  %s1960_s4 = inlined_call_operand.vmem [shape: f32[1,256], index: 4, kind: input, shape index: {}]   ;;  %s1961_s5 = inlined_call_operand.hbm [shape: bf16[256,128], index: 5, kind: input, shape index: {}]   ;;  %s1962_s6 = inlined_call_operand.vmem [shape: f32[1,128], index: 6, kind: input, shape index: {}]   ;;  %s1963_s7 = inlined_call_operand.hbm [shape: bf16[128,128], index: 7, kind: input, shape index: {}]   ;;  %s1964_s8 = inlined_call_operand.vmem [shape: f32[1,128], index: 8, kind: input, shape index: {}]   ;;  %s1965_s9 = inlined_call_operand.hbm [shape: bf16[16,128], index: 9, kind: output, shape index: {}]  }
   0x1   :  { %1972 = sst [smem:[#allocation16_spill]] %s1957_s1 }
   0x2   :  { %1973 = sst [smem:[#allocation17_spill]] %s1965_s9 }
   0x3   :  { %14 = vsyncpa [#allocation3], 0 }
   0x4   :  { %16 = vsyncpa [#allocation3 + $0x1], 0 }
   0x5   :  { %17 = vsyncpa [#allocation6], 0 }
   0x6   :  { %18 = vsyncpa [#allocation9], 0 }
   0x7   :  { %19 = vsyncpa [#allocation4], 0 }
   0x8   :  { %21 = vsyncpa [#allocation4 + $0x1], 0  ;;  %s1640_s30 = smov 0   ;;  %s1642_s10 = smov 0  }
   0x9   :  { %s1644_s11 = smov 0   ;;  %s1646_s12 = smov 0  }
   0xa LB: > { %s1577_s13 = smov [#allocation5]   ;;  %s1661_s15 = sadd.s32 4294967295, %s1575_s12   ;;  %s1575_s12 = sphi %s1646_s12, %s1998_s12   ;;  %s1571_s11 = sphi %s1644_s11, %s1997_s11   ;;  %s1567_s10 = sphi %s1642_s10, %s1996_s10   ;;  %s1563_s30 = sphi %s1640_s30, %s1995_s30  }
   0xb   : > { %s264_s14 = sshll.u32 %s1577_s13, 4  ;;  %p1068_p0 = scmp.ge.s32.totalorder %s1575_s12, 1  ;;  %s1666_s14 = int_to_ptr.vmem [resolvable:$true] %s264_s14 }
   0xc   : > { %p1969_p1 = scmp.eq.s32.totalorder %s1661_s15, 0  ;;  %p252_p2 = scmp.lt.s32.totalorder %s1575_s12, 3 }
   0xd   : > { %s1578_s17 = smov [#allocation8]   ;;  %s1579_s20 = smov [#allocation7]  }
   0xe   : > { %p1668_p3 = pnand %p1068_p0, %p252_p2  ;;  %s296_s18 = sshll.u32 %s1578_s17, 4  ;;  %s1681_s18 = int_to_ptr.vmem [resolvable:$true] %s296_s18 }
   0xf   : > { %s280_s21 = sshll.u32 %s1579_s20, 4  ;;  %s1976_s1 = sld [smem:[#allocation16_spill]]  ;;  %s1683_s21 = int_to_ptr.vmem [resolvable:$true] %s280_s21 }
  0x10   : > { %s1974_s16 = scalar_select %p1668_p3, 1, 0 }
  0x11   : > { %p1219_p5 = pneg %p1668_p3 }
  0x13   : > { %p1677_p6 = pnand %p1219_p5, %p1969_p1 }
  0x15   : > { %s1359_s24 = scalar_lea.hbm %s1976_s1, 192  ;;  %p1693_p8 = pneg %p1677_p6 }
  0x16   : > { %p1360_p7 = scmp.ne.s32.totalorder %s1976_s1, %s1359_s24  ;;  %p1366_p11 = scmp.lt.u32.totalorder %s1359_s24, %s1976_s1 }
  0x18   : > { %p1362_p9 = pnand %p1693_p8, %p1360_p7 }
  0x1a   : > { %p1363_p10 = pneg %p1362_p9 }
  0x1c   : > { %p1368_p12 = pnand %p1366_p11, %p1363_p10 }
  0x1e   : > { %1371 = shalt.err (!%p1368_p12)
}
  0x1f   : > { %s1372_s13 = scalar_lea.vmem %s1666_s14, 192  ;;  %p1380_p5 = scmp.lt.s32.totalorder %s1666_s14, %s1666_s14 }
  0x20   : > { %p1373_p13 = scmp.ne.s32.totalorder %s1666_s14, %s1372_s13  ;;  %p1381_p4 = scmp.lt.s32.totalorder %s1372_s13, %s1372_s13 }
  0x22   : > { %p1375_p0 = pnand %p1373_p13, %p1693_p8  ;;  %p1382_p7 = por %p1381_p4, %p1380_p5 }
  0x24   : > { %p1376_p2 = pneg %p1375_p0 }
  0x26   : > { %p1383_p9 = pnand %p1382_p7, %p1376_p2 }
  0x28   : > { %1386 = shalt.err (!%p1383_p9)
}
  0x29   : > { %s1967_s17 = smov 64   ;;  %s1968_s20 = smov 4  }
  0x2a   : > { %1222 = dma.hbm_to_vmem [thread:$0]  (!%p1677_p6), %s1976_s1, 192, %s1666_s14, [#allocation6], %s1967_s17, %s1967_s17, %s1968_s20  }
  0x2b   : > { %s1387_s26 = scalar_lea.hbm %s1961_s5, 2048 }
  0x2c   : > { %p1388_p4 = scmp.ne.s32.totalorder %s1961_s5, %s1387_s26  ;;  %p1394_p12 = scmp.lt.u32.totalorder %s1387_s26, %s1961_s5 }
  0x2e   : > { %p1390_p10 = pnand %p1388_p4, %p1693_p8 }
  0x30   : > { %p1391_p11 = pneg %p1390_p10 }
  0x32   : > { %p1396_p13 = pnand %p1394_p12, %p1391_p11 }
  0x34   : > { %1399 = shalt.err (!%p1396_p13)
}
  0x35   : > { %s1400_s14 = scalar_lea.vmem %s1681_s18, 2048  ;;  %p1408_p7 = scmp.lt.s32.totalorder %s1681_s18, %s1681_s18 }
  0x36   : > { %p1401_p0 = scmp.ne.s32.totalorder %s1681_s18, %s1400_s14  ;;  %p1409_p9 = scmp.lt.s32.totalorder %s1400_s14, %s1400_s14 }
  0x38   : > { %p1403_p2 = pnand %p1401_p0, %p1693_p8  ;;  %p1410_p4 = por %p1409_p9, %p1408_p7 }
  0x3a   : > { %p1404_p5 = pneg %p1403_p2 }
  0x3c   : > { %p1411_p10 = pnand %p1410_p4, %p1404_p5 }
  0x3e   : > { %1414 = shalt.err (!%p1411_p10)
}
  0x3f   : > { %1228 = dma.hbm_to_vmem [thread:$0]  (!%p1677_p6), %s1961_s5, 2048, %s1681_s18, [#allocation9], %s1967_s17, %s1967_s17, %s1968_s20  }
  0x40   : > { %s1415_s25 = scalar_lea.hbm %s1959_s3, 2048 }
  0x41   : > { %p1416_p11 = scmp.ne.s32.totalorder %s1959_s3, %s1415_s25  ;;  %p1422_p0 = scmp.lt.u32.totalorder %s1415_s25, %s1959_s3 }
  0x43   : > { %p1418_p12 = pnand %p1416_p11, %p1693_p8 }
  0x45   : > { %p1419_p13 = pneg %p1418_p12 }
  0x47   : > { %p1424_p2 = pnand %p1422_p0, %p1419_p13 }
  0x49   : > { %1427 = shalt.err (!%p1424_p2)
}
  0x4a   : > { %s1428_s18 = scalar_lea.vmem %s1683_s21, 2048  ;;  %p1436_p4 = scmp.lt.s32.totalorder %s1683_s21, %s1683_s21 }
  0x4b   : > { %p1429_p5 = scmp.ne.s32.totalorder %s1683_s21, %s1428_s18  ;;  %p1437_p10 = scmp.lt.s32.totalorder %s1428_s18, %s1428_s18 }
  0x4d   : > { %p1431_p7 = pnand %p1429_p5, %p1693_p8  ;;  %p1438_p11 = por %p1437_p10, %p1436_p4 }
  0x4f   : > { %p1432_p9 = pneg %p1431_p7 }
  0x51   : > { %p1439_p12 = pnand %p1438_p11, %p1432_p9 }
  0x53   : > { %1442 = shalt.err (!%p1439_p12)
}
  0x54   : > { %s1582_s14 = smov 128   ;;  %s1583_s9 = smov 8  }
  0x55   : > { %1225 = dma.hbm_to_vmem [thread:$0]  (!%p1677_p6), %s1959_s3, 2048, %s1683_s21, [#allocation6], %s1582_s14, %s1582_s14, %s1583_s9  }
  0x56   : > { %s1584_s24 = smov [#allocation10]   ;;  %s1443_s29 = scalar_lea.hbm %s1963_s7, 1024 }
  0x57   : > { %s312_s25 = sshll.u32 %s1584_s24, 4  ;;  %p1444_p13 = scmp.ne.s32.totalorder %s1963_s7, %s1443_s29  ;;  %s313_s25 = int_to_ptr.vmem [resolvable:$true] %s312_s25 }
  0x58   : > { %p1450_p5 = scmp.lt.u32.totalorder %s1443_s29, %s1963_s7 }
  0x59   : > { %p1446_p0 = pnand %p1444_p13, %p1693_p8 }
  0x5b   : > { %p1447_p2 = pneg %p1446_p0 }
  0x5d   : > { %p1452_p7 = pnand %p1450_p5, %p1447_p2 }
  0x5f   : > { %1455 = shalt.err (!%p1452_p7)
}
  0x60   : > { %s1456_s21 = scalar_lea.vmem %s313_s25, 1024  ;;  %p1464_p11 = scmp.lt.s32.totalorder %s313_s25, %s313_s25 }
  0x61   : > { %p1457_p9 = scmp.ne.s32.totalorder %s313_s25, %s1456_s21  ;;  %p1465_p12 = scmp.lt.s32.totalorder %s1456_s21, %s1456_s21 }
  0x63   : > { %p1459_p4 = pnand %p1457_p9, %p1693_p8  ;;  %p1466_p1 = por %p1465_p12, %p1464_p11 }
  0x65   : > { %p1460_p10 = pneg %p1459_p4 }
  0x67   : > { %p1467_p3 = pnand %p1466_p1, %p1460_p10 }
  0x69   : > { %1470 = shalt.err (!%p1467_p3)
}
  0x6a   : > { %s1978_s14 = smov 4   ;;  %s1979_s9 = smov 64  }
  0x6b   : > { %1231 = dma.hbm_to_vmem [thread:$0]  (!%p1677_p6), %s1963_s7, 1024, %s313_s25, [#allocation9], %s1979_s9, %s1979_s9, %s1978_s14  }
  0x6c   : > { %s1067_s19 = sadd.s32 4294967294, %s1575_s12   ;;  %s1789_s27 = sadd.s32 1, %s1575_s12  }
  0x6d   : > { %s31_s22 = ssub.s32 %s1575_s12, %s1789_s27  ;;  %s34_s23 = sadd.s32 1, %s1571_s11 }
  0x6e   : > { %p32_p1 = scmp.eq.s32.totalorder %s31_s22, 0  ;;  %p41_p3 = scmp.ne.s32.totalorder %s1571_s11, %s1567_s10 }
  0x6f   : > { %p42_p8 = scmp.eq.s32.totalorder %s1575_s12, 0  ;;  %p47_p13 = scmp.ne.s32.totalorder %s1567_s10, %s1563_s30 }
  0x70   : > { %s1800_s24 = scalar_select %p32_p1, %s1571_s11, %s34_s23  }
  0x71   : > { %p1802_p0 = por %p42_p8, %p41_p3  ;;  %p1981_p2 = scmp.eq.s32.totalorder %s1661_s15, 0 }
  0x72   : > { %p239_p5 = scmp.eq.s32.totalorder %s1661_s15, 1  ;;  %p245_p7 = scmp.eq.s32.totalorder %s1067_s19, 1 }
  0x73   : > { %p1808_p6 = por %p1981_p2, %p47_p13  ;;  %p1244_p9 = scmp.lt.s32.totalorder %s1575_s12, 2 }
  0x74   : > { %s329_s28 = sand.u32 1, %s1571_s11   ;;  %p1815_p4 = por %p239_p5, %p41_p3 }
  0x75   : > { %p1819_p10 = por %p245_p7, %p47_p13  ;;  %s1074_s18 = sshll.u32 %s329_s28, 3 }
  0x76   : > { %s1983_s29 = scalar_select %p1815_p4, 1, 0 }
  0x77   : > { %s1984_s13 = scalar_select %p1819_p10, 1, 0 }
  0x78   : > { %s1075_s21 = sshll.u32 %s1575_s12, 7  ;;  %s333_s20 = scalar_lea.vmem [#allocation2], %s1074_s18 }
  0x79   : > { %s1827_s17 = scalar_lea.hbm %s1956_s0, %s1075_s21  ;;  %s340_s19 = sshll.u32 %s333_s20, 4  ;;  %s1829_s19 = int_to_ptr.vmem [resolvable:$true] %s340_s19 }
  0x7a   : > { %p1833_p11 = pnand %p1244_p9, %p1802_p0  ;;  %s330_s23 = scalar_lea.sflag [#allocation3], %s329_s28 }
  0x7b   : > { %s1471_s1 = scalar_lea.hbm %s1827_s17, 128  ;;  %s1476_s14 = scalar_lea.hbm %s1956_s0, 256 }
  0x7c   : > { %p1472_p12 = scmp.ne.s32.totalorder %s1827_s17, %s1471_s1  ;;  %p1473_p1 = pneg %p1833_p11 }
  0x7d   : > { %p1477_p13 = scmp.lt.u32.totalorder %s1827_s17, %s1956_s0  ;;  %p1478_p0 = scmp.lt.u32.totalorder %s1476_s14, %s1471_s1 }
  0x7e   : > { %p1474_p3 = pnand %p1473_p1, %p1472_p12  ;;  %p1480_p5 = scmp.lt.u32.totalorder %s1471_s1, %s1827_s17 }
  0x7f   : > { %p1479_p2 = por %p1478_p0, %p1477_p13 }
  0x80   : > { %p1475_p8 = pneg %p1474_p3 }
  0x81   : > { %p1481_p7 = por %p1480_p5, %p1479_p2 }
  0x83   : > { %p1482_p9 = pnand %p1481_p7, %p1475_p8 }
  0x85   : > { %1485 = shalt.err (!%p1482_p9)
}
  0x86   : > { %s1486_s28 = scalar_lea.vmem %s1829_s19, 128  ;;  %s1585_s20 = smov [#allocation2]  }
  0x87   : > { %p1487_p12 = scmp.ne.s32.totalorder %s1829_s19, %s1486_s28  ;;  %s1491_s18 = sshll.u32 %s1585_s20, 4  ;;  %s1492_s18 = int_to_ptr.vmem [resolvable:$false] %s1491_s18 }
  0x88   : > { %s1493_s21 = scalar_lea.vmem %s1492_s18, 256  ;;  %p1494_p4 = scmp.lt.s32.totalorder %s1829_s19, %s1492_s18 }
  0x89   : > { %p1489_p3 = pnand %p1487_p12, %p1473_p1  ;;  %p1495_p13 = scmp.lt.s32.totalorder %s1493_s21, %s1486_s28 }
  0x8b   : > { %p1490_p10 = pneg %p1489_p3  ;;  %p1496_p0 = por %p1495_p13, %p1494_p4 }
  0x8d   : > { %p1497_p2 = pnand %p1496_p0, %p1490_p10 }
  0x8f   : > { %1500 = shalt.err (!%p1497_p2)
}
  0x90   : > { %1235 = dma.hbm_to_vmem [thread:$0]  (!%p1833_p11), %s1827_s17, 128, %s1829_s19, %s330_s23  }
  0x91   : > { %p1986_p8 = scmp.ne.s32.totalorder %s1974_s16, 0 }
  0x92   : > { %s1865_s1 = sand.u32 (!%p1986_p8), 1, %s1567_s10  }
  0x93   : > { %349 = sbr.rel (%p1986_p8) target bundleno = 1137 (0x471), region = 56  ;;  %s1077_s14 = sshll.u32 (!%p1986_p8), %s1865_s1, 3 }
  0x94   : > { %s352_s26 = scalar_lea.sflag (!%p1986_p8), [#allocation3], %s1865_s1  ;;  %s355_s9 = scalar_lea.vmem (!%p1986_p8), [#allocation2], %s1077_s14 }
  0x9a   : > { %1546 = dma.done.wait (%p1808_p6), %s352_s26, 128  }
  0x9b   : > { %1548 = vsyncadd (%p1808_p6), %s352_s26, 4294967168  ;;  %p1987_p4 = scmp.eq.s32.totalorder %s1661_s15, 0 }
  0x9d   : > { %1550 = dma.done.wait (%p1987_p4), [#allocation6], 2240   ;;  %p1988_p10 = pmov %p1987_p4 }
  0x9e   : > { %p1989_p11 = pmov %p1987_p4 }
  0x9f   : > { %1552 = vsyncadd (%p1988_p10), [#allocation6], 4294965056 }
  0xa0   : > { %1554 = dma.done.wait (%p1989_p11), [#allocation9], 3072   ;;  %p1990_p1 = pmov %p1987_p4 }
  0xa1   : > { %v1586_v0 = vmov 0.0   ;;  %vm1587_vm0 = vmmov 0   ;;  %v1293_v1 = vld [vmem:[#allocation5] sm:$0xff]   ;;  %vm432_vm1 = vcmask 1041408   ;;  %v407_v3 = vld [vmem:[%s355_s9] sm:$0xff]  ;;  %vm428_vm2 = vcmask 162816  }
  0xa2   : > { %1556 = vsyncadd (%p1990_p1), [#allocation9], 4294964224  ;;  %1171 = vmatprep.subr.bf16.mxu0 %v1586_v0  ;;  %1175 = vmatprep.mubr.msk.bf16.mxu0 %vm1587_vm0, %v1586_v0  ;;  %v1294_v2 = vld [vmem:[#allocation5 + $0x8] ss:$0 sps:$4 sm:$0x33]   ;;  %v408_v5 = vpack.c.bf16 %v407_v3, %v407_v3  ;;  %v1588_v22 = vmov 0   ;;  %v502_v51 = vlaneseq }
  0xa3   : > { %1172 = vmatpush3.bf16.msra.mxu0 %v1293_v1  ;;  %v434_v4 = vsel %vm432_vm1, %v1294_v2, 0  ;;  %v1295_v6 = vld [vmem:[#allocation7 + $0x4] ss:$8 sps:$4 sm:$0xff]   ;;  %v1297_v7 = vld [vmem:[#allocation7] ss:$8 sps:$4 sm:$0xff]   ;;  %624 = vmatprep.mubr.bf16.mxu1 %v1588_v22  ;;  %v1323_v39 = vld [vmem:[#allocation8 + $0x50] sm:$0xff]  }
  0xa4   : > { %1173 = vmatprep.subr.bf16.mxu0 %v1586_v0  ;;  %592 = vmatprep.subr.bf16.mxu1 %v1295_v6  ;;  %v1298_v8 = vld [vmem:[#allocation7 + $0x14] ss:$8 sps:$4 sm:$0xff]   ;;  %v1300_v9 = vld [vmem:[#allocation7 + $0x10] ss:$8 sps:$4 sm:$0xff]   ;;  %v1301_v10 = vld [vmem:[#allocation7 + $0x24] ss:$8 sps:$4 sm:$0xff]  }
  0xa5   : > { %593 = vmatpush1.bf16.msra.mxu1 %v1297_v7  ;;  %v1303_v11 = vld [vmem:[#allocation7 + $0x20] ss:$8 sps:$4 sm:$0xff]   ;;  %v1304_v12 = vld [vmem:[#allocation7 + $0x34] ss:$8 sps:$4 sm:$0xff]   ;;  %v1306_v13 = vld [vmem:[#allocation7 + $0x30] ss:$8 sps:$4 sm:$0xff]  }
  0xa6   : > { %594 = vmatprep.subr.bf16.mxu1 %v1298_v8  ;;  %v1307_v14 = vld [vmem:[#allocation7 + $0x44] ss:$8 sps:$4 sm:$0xff]   ;;  %v1309_v15 = vld [vmem:[#allocation7 + $0x40] ss:$8 sps:$4 sm:$0xff]   ;;  %v1310_v16 = vld [vmem:[#allocation7 + $0x54] ss:$8 sps:$4 sm:$0xff]  }
  0xa7   : > { %1174 = vmatpush3.bf16.msra.mxu0 %v434_v4  ;;  %v1312_v17 = vld [vmem:[#allocation7 + $0x50] ss:$8 sps:$4 sm:$0xff]   ;;  %v1313_v18 = vld [vmem:[#allocation7 + $0x64] ss:$8 sps:$4 sm:$0xff]   ;;  %v1315_v19 = vld [vmem:[#allocation7 + $0x60] ss:$8 sps:$4 sm:$0xff]  }
  0xa8   : > { %v1316_v20 = vld [vmem:[#allocation7 + $0x74] ss:$8 sps:$4 sm:$0xff]   ;;  %v1318_v21 = vld [vmem:[#allocation7 + $0x70] ss:$8 sps:$4 sm:$0xff]   ;;  %v1083_v23 = vld [vmem:[%s1958_s2] ss:$0 sm:$0xff] }
  0xa9   : > { %595 = vmatpush1.bf16.msra.mxu1 %v1300_v9  ;;  %v1319_v35 = vld [vmem:[#allocation8 + $0x40] sm:$0xff]   ;;  %v1321_v37 = vld [vmem:[#allocation8 + $0x48] sm:$0xff]   ;;  %v1324_v40 = vld [vmem:[#allocation8 + $0x10] sm:$0xff]   ;;  %v503_v52 = vshrl.u32 %v502_v51, 7  ;;  %s1082_s28 = sshll.u32 %s1865_s1, 2  ;;  %s1134_s21 = sshll.u32 %s1661_s15, 6 }
  0xaa   : > { %1176 = vmatmul.mubr.msk.bf16.vlgmr.msra.gmra.mrb[0].mxu0 %vm428_vm2, %v408_v5  ;;  %596 = vmatprep.subr.bf16.mxu1 %v1301_v10  ;;  %v1320_v36 = vld [vmem:[#allocation8] sm:$0xff]   ;;  %v1322_v38 = vld [vmem:[#allocation8 + $0x8] sm:$0xff]   ;;  %v1325_v41 = vld [vmem:[#allocation8 + $0x58] sm:$0xff]   ;;  %s405_s14 = scalar_lea.vmem [#allocation11], %s1082_s28  ;;  %s1991_s25 = sld [smem:[#allocation17_spill]] }
  0xab   : > { %1140 = vmatprep.subr.bf16.mxu0 %v1319_v35  ;;  %v1326_v42 = vld [vmem:[#allocation8 + $0x18] sm:$0xff]   ;;  %v1327_v43 = vld [vmem:[#allocation8 + $0x60] sm:$0xff]   ;;  %v1329_v45 = vld [vmem:[#allocation8 + $0x68] sm:$0xff]   ;;  %v504_v53 = vsub.s32 0, %v503_v52  ;;  %v508_v55 = vsub.s32 1, %v503_v52  ;;  %s959_s26 = sshll.u32 %s405_s14, 4  ;;  %s1914_s26 = int_to_ptr.vmem [resolvable:$true] %s959_s26 }
  0xac   : > { %1141 = vmatpush3.bf16.msra.mxu0 %v1320_v36  ;;  %v1328_v44 = vld [vmem:[#allocation8 + $0x20] sm:$0xff]   ;;  %v1330_v46 = vld [vmem:[#allocation8 + $0x28] sm:$0xff]   ;;  %v1331_v47 = vld [vmem:[#allocation8 + $0x70] sm:$0xff]   ;;  %s946_s19 = scalar_lea.sflag [#allocation4], %s1865_s1  ;;  %s1501_s15 = scalar_lea.vmem %s1914_s26, 64 }
  0xad   : > { %597 = vmatpush1.bf16.msra.mxu1 %v1303_v11  ;;  %1142 = vmatprep.subr.bf16.mxu0 %v1321_v37  ;;  %v1332_v48 = vld [vmem:[#allocation8 + $0x30] sm:$0xff]   ;;  %v1333_v49 = vld [vmem:[#allocation8 + $0x78] sm:$0xff]   ;;  %v500_v54 = vld [vmem:[%s1960_s4] sm:$0x3]  ;;  %p1502_p6 = scmp.ne.s32.totalorder %s1914_s26, %s1501_s15  ;;  %p1992_p5 = scmp.ne.s32.totalorder %s1983_s29, 0 }
  0xae   : > { %598 = vmatprep.subr.bf16.mxu1 %v1304_v12  ;;  %v1334_v50 = vld [vmem:[#allocation8 + $0x38] sm:$0xff]   ;;  %v505_v56 = vrot.slane %v500_v54, %v504_v53  ;;  %v509_v57 = vrot.slane %v500_v54, %v508_v55  ;;  %v1106_v22 = vld [vmem:[%s1962_s6] ss:$0 sm:$0xff]  ;;  %s1589_s22 = smov [#allocation11]  }
  0xaf   : > { %p1503_p7 = pnand %p1502_p6, %p1992_p5  ;;  %s1505_s23 = sshll.u32 %s1589_s22, 4  ;;  %s1506_s23 = int_to_ptr.vmem [resolvable:$false] %s1505_s23 }
  0xb0   : > { %1143 = vmatpush3.bf16.msra.mxu0 %v1322_v38  ;;  %s1912_s17 = scalar_lea.hbm %s1991_s25, %s1134_s21  ;;  %s1507_s28 = scalar_lea.vmem %s1506_s23, 128 }
  0xb1   : > { %599 = vmatpush1.bf16.msra.mxu1 %v1306_v13  ;;  %1144 = vmatprep.subr.bf16.mxu0 %v1323_v39  ;;  %v1335_v13 = vld [vmem:[#allocation10] sm:$0xff]   ;;  %p1504_p9 = pneg %p1503_p7  ;;  %p1508_p12 = scmp.lt.s32.totalorder %s1914_s26, %s1506_s23 }
  0xb2   : > { %600 = vmatprep.subr.bf16.mxu1 %v1307_v14  ;;  %v1336_v14 = vld [vmem:[#allocation10 + $0x8] sm:$0xff]   ;;  %p1509_p3 = scmp.lt.s32.totalorder %s1507_s28, %s1501_s15 }
  0xb4   : > { %1145 = vmatpush3.bf16.msra.mxu0 %v1324_v40  ;;  %p1510_p13 = por %p1509_p3, %p1508_p12 }
  0xb5   : > { %601 = vmatpush1.bf16.msra.mxu1 %v1309_v15  ;;  %1146 = vmatprep.subr.bf16.mxu0 %v1325_v41  ;;  %v1337_v15 = vld [vmem:[#allocation10 + $0x10] sm:$0xff]  }
  0xb6   : > { %602 = vmatprep.subr.bf16.mxu1 %v1310_v16  ;;  %v1338_v16 = vld [vmem:[#allocation10 + $0x18] sm:$0xff]   ;;  %p1511_p0 = pnand %p1510_p13, %p1504_p9 }
  0xb8   : > { %1147 = vmatpush3.bf16.msra.mxu0 %v1326_v42 }
  0xb9   : > { %603 = vmatpush1.bf16.msra.mxu1 %v1312_v17  ;;  %1148 = vmatprep.subr.bf16.mxu0 %v1327_v43  ;;  %v1339_v17 = vld [vmem:[#allocation10 + $0x20] sm:$0xff]  }
  0xba   : > { %604 = vmatprep.subr.bf16.mxu1 %v1313_v18  ;;  %v1340_v18 = vld [vmem:[#allocation10 + $0x28] sm:$0xff]  }
  0xbc   : > { %1149 = vmatpush3.bf16.msra.mxu0 %v1328_v44 }
  0xbd   : > { %605 = vmatpush1.bf16.msra.mxu1 %v1315_v19  ;;  %1150 = vmatprep.subr.bf16.mxu0 %v1329_v45  ;;  %v1341_v19 = vld [vmem:[#allocation10 + $0x30] sm:$0xff]  }
  0xbe   : > { %606 = vmatprep.subr.bf16.mxu1 %v1316_v20  ;;  %v1342_v20 = vld [vmem:[#allocation10 + $0x38] sm:$0xff]  }
  0xc0   : > { %1151 = vmatpush3.bf16.msra.mxu0 %v1330_v46 }
  0xc1   : > { %607 = vmatpush1.bf16.msra.mxu1 %v1318_v21  ;;  %1152 = vmatprep.subr.bf16.mxu0 %v1331_v47 }
  0xc2   : > { %1179 = vmatprep.subr.bf16.mxu1 %v1586_v0 }
  0xc4   : > { %1153 = vmatpush3.bf16.msra.mxu0 %v1332_v48 }
  0xc5   : > { %1154 = vmatprep.subr.bf16.mxu0 %v1333_v49 }
  0xc8   : > { %1155 = vmatpush3.bf16.msra.mxu0 %v1334_v50 }
 0x17d   : > { %v470_v24 = vpop.f32.mrb[0].mxu0 }
 0x17e   : > { %v471_v25 = vadd.f32 %v1083_v23, %v470_v24  ;;  %v1177_v26 = vpop.f32.mrb[1].mxu0 }
 0x17f   : > { %v473_v27 = vpop.f32.mrb[2].mxu0 }
 0x180   : > { %v1087_v28 = vmul.f32 -1.442695, %v471_v25  ;;  %v1178_v29 = vpop.f32.mrb[3].mxu0 }
 0x182   : > { %1343 = vpow2.f32 %v1087_v28 }
 0x18c   : > { %v1344_v30 = vpop.eup %1343 }
 0x18d   : > { %v479_v31 = vadd.f32 1.0, %v1344_v30 }
 0x18f   : > { %1345 = vrcp.f32 %v479_v31 }
 0x199   : > { %v1346_v32 = vpop.eup %1345 }
 0x19a   : > { %v482_v33 = vmul.f32 %v1346_v32, %v471_v25 }
 0x19c   : > { %v483_v34 = vpack.c.bf16 %v482_v33, %v482_v33  ;;  %v1124_v33 = vld [vmem:[%s1964_s8] ss:$0 sm:$0xff] }
 0x19e   : > { %625 = vmatmul.mubr.bf16.vlgmr.msra.gmra.mrb[0].mxu1 %v483_v34 }
 0x19f   : > { %1195 = vmatprep.mubr.msk.bf16.mxu1 %vm1587_vm0, %v1586_v0  ;;  %1180 = vmatpush3.bf16.msra.mxu1 %v1335_v13 }
 0x1a0   : > { %1181 = vmatprep.subr.bf16.mxu1 %v1586_v0 }
 0x1a3   : > { %1182 = vmatpush3.bf16.msra.mxu1 %v1336_v14 }
 0x1a4   : > { %1183 = vmatprep.subr.bf16.mxu1 %v1586_v0 }
 0x1a7   : > { %1184 = vmatpush3.bf16.msra.mxu1 %v1337_v15 }
 0x1a8   : > { %1185 = vmatprep.subr.bf16.mxu1 %v1586_v0 }
 0x1ab   : > { %1186 = vmatpush3.bf16.msra.mxu1 %v1338_v16 }
 0x1ac   : > { %1187 = vmatprep.subr.bf16.mxu1 %v1586_v0 }
 0x1af   : > { %1188 = vmatpush3.bf16.msra.mxu1 %v1339_v17 }
 0x1b0   : > { %1189 = vmatprep.subr.bf16.mxu1 %v1586_v0 }
 0x1b3   : > { %1190 = vmatpush3.bf16.msra.mxu1 %v1340_v18 }
 0x1b4   : > { %1191 = vmatprep.subr.bf16.mxu1 %v1586_v0 }
 0x1b7   : > { %1192 = vmatpush3.bf16.msra.mxu1 %v1341_v19 }
 0x1b8   : > { %1193 = vmatprep.subr.bf16.mxu1 %v1586_v0 }
 0x1bb   : > { %1194 = vmatpush3.bf16.msra.mxu1 %v1342_v20 }
 0x271   : > { %v626_v58 = vpop.f32.mrb[0].mxu1 }
 0x272   : > { %v627_v59 = vadd.f32 %v626_v58, %v505_v56  ;;  %v628_v60 = vpop.f32.mrb[1].mxu1 }
 0x273   : > { %v629_v61 = vadd.f32 %v628_v60, %v509_v57  ;;  %v630_v62 = vpop.f32.mrb[2].mxu1 }
 0x274   : > { %v1104_v63 = vmul.f32 -1.442695, %v627_v59  ;;  %v631_v1 = vpop.f32.mrb[3].mxu1 }
 0x275   : > { %v1105_v2 = vmul.f32 -1.442695, %v629_v61 }
 0x276   : > { %1347 = vpow2.f32 %v1104_v63 }
 0x277   : > { %1349 = vpow2.f32 %v1105_v2 }
 0x280   : > { %v1348_v3 = vpop.eup %1347 }
 0x281   : > { %v1350_v4 = vpop.eup %1349  ;;  %v639_v5 = vadd.f32 1.0, %v1348_v3 }
 0x282   : > { %v640_v6 = vadd.f32 1.0, %v1350_v4 }
 0x283   : > { %1351 = vrcp.f32 %v639_v5 }
 0x284   : > { %1353 = vrcp.f32 %v640_v6 }
 0x28d   : > { %v1352_v7 = vpop.eup %1351 }
 0x28e   : > { %v1354_v8 = vpop.eup %1353  ;;  %v645_v9 = vmul.f32 %v1352_v7, %v627_v59 }
 0x28f   : > { %v646_v10 = vmul.f32 %v1354_v8, %v629_v61 }
 0x290   : > { %v647_v12 = vpack.c.bf16 %v645_v9, %v645_v9 }
 0x291   : > { %v648_v11 = vpack.c.bf16 %v646_v10, %v646_v10 }
 0x293   : > { %816 = vmatprep.mubr.bf16.mxu0 %v648_v11 }
 0x294   : > { %817 = vmatmul.mubr.bf16.vlgmr.msra.gmra.mrb[4].mxu0 %v647_v12 }
 0x367   : > { %v1156_v21 = vpop.f32.mrb[4].mxu0 }
 0x368   : > { %v1157_v23 = vpop.f32.mrb[5].mxu0 }
 0x369   : > { %v1158_v24 = vadd.f32 %v1157_v23, %v1156_v21  ;;  %v1159_v25 = vpop.f32.mrb[6].mxu0 }
 0x36a   : > { %v1160_v26 = vpop.f32.mrb[7].mxu0 }
 0x36b   : > { %v819_v27 = vadd.f32 %v1158_v24, %v1106_v22 }
 0x36d   : > { %v1123_v28 = vmul.f32 -1.442695, %v819_v27 }
 0x36f   : > { %1355 = vpow2.f32 %v1123_v28 }
 0x379   : > { %v1356_v29 = vpop.eup %1355 }
 0x37a   : > { %v827_v30 = vadd.f32 1.0, %v1356_v29 }
 0x37c   : > { %1357 = vrcp.f32 %v827_v30 }
 0x386   : > { %v1358_v0 = vpop.eup %1357 }
 0x387   : > { %v830_v31 = vmul.f32 %v1358_v0, %v819_v27 }
 0x389   : > { %v831_v32 = vpack.c.bf16 %v830_v31, %v830_v31 }
 0x38b   : > { %1196 = vmatmul.mubr.bf16.vlgmr.msra.gmra.mrb[4].mxu1 %v831_v32 }
 0x45e   : > { %v937_v34 = vpop.f32.mrb[4].mxu1 }
 0x45f   : > { %v938_v35 = vadd.f32 %v1124_v33, %v937_v34  ;;  %v1197_v36 = vpop.f32.mrb[5].mxu1 }
 0x460   : > { %v940_v37 = vpop.f32.mrb[6].mxu1 }
 0x461   : > { %v943_v38 = vpack.c.bf16 %v938_v35, %v938_v35  ;;  %v1198_v39 = vpop.f32.mrb[7].mxu1 }
 0x463   : > { %944 = vst [vmem:[%s405_s14] sm:$0xf] %v943_v38 }
 0x464   : > { %1514 = shalt.err (!%p1511_p0)
}
 0x465   : > { %s1515_s1 = scalar_lea.hbm %s1912_s17, 64  ;;  %s1519_s21 = scalar_lea.hbm %s1991_s25, 128 }
 0x466   : > { %p1516_p2 = scmp.ne.s32.totalorder %s1912_s17, %s1515_s1  ;;  %p1520_p10 = scmp.lt.u32.totalorder %s1912_s17, %s1991_s25 }
 0x467   : > { %p1521_p11 = scmp.lt.u32.totalorder %s1519_s21, %s1515_s1  ;;  %p1523_p6 = scmp.lt.u32.totalorder %s1515_s1, %s1912_s17 }
 0x468   : > { %p1517_p8 = pnand %p1516_p2, %p1992_p5 }
 0x469   : > { %p1522_p1 = por %p1521_p11, %p1520_p10 }
 0x46a   : > { %p1518_p4 = pneg %p1517_p8 }
 0x46b   : > { %p1524_p7 = por %p1523_p6, %p1522_p1 }
 0x46d   : > { %p1525_p9 = pnand %p1524_p7, %p1518_p4 }
 0x46f   : > { %1528 = shalt.err (!%p1525_p9)
}
 0x470   : > { %1217 = dma.vmem_to_hbm [thread:$0]  (%p1992_p5), %s1914_s26, 64, %s1912_s17, %s946_s19  }
 0x471 PF: > { %s971_s16 = sand.u32 1, %s1563_s30   ;;  %p1993_p12 = scmp.ne.s32.totalorder %s1984_s13, 0 }
 0x472   : > { %p1994_p3 = scmp.ge.s32.totalorder %s1575_s12, 2  ;;  %s972_s15 = scalar_lea.sflag [#allocation4], %s971_s16 }
 0x474   : > { %p1237_p13 = pnand %p1994_p3, %p1993_p12 }
 0x476   : > { %1558 = dma.done.wait (!%p1237_p13), %s972_s15, 64  }
 0x477   : > { %1560 = vsyncadd (!%p1237_p13), %s972_s15, 4294967232  ;;  %p24_p0 = scmp.ge.s32.totalorder %s1789_s27, 4   ;;  %s1995_s30 = smov %s1567_s10 }
 0x478   : > { %s1996_s10 = smov %s1571_s11  ;;  %s1997_s11 = smov %s1800_s24 }
 0x479   : > { %s1998_s12 = smov %s1789_s27  ;;  %26 = sbr.rel (!%p24_p0) target bundleno = 10 (0xa), region = 117 }
 0x480   :  { %977 = vsyncpa [#allocation3], 1 }
 0x481   :  { %979 = vsyncpa [#allocation3 + $0x1], 1 }
 0x482   :  { %980 = vsyncpa [#allocation6], 1 }
 0x483   :  { %981 = vsyncpa [#allocation9], 1 }
 0x484   :  { %982 = vsyncpa [#allocation4], 1 }
 0x485   :  { %984 = vsyncpa [#allocation4 + $0x1], 1 }

</bundles_post_ra>
